<compile_context>
chip_gen: v7x
topology: tpu7x:2x2x1
jax: 0.10.0
libtpu: 0.0.40
codegen_flags: <defaults>
</compile_context>

<pallas_src>
import functools

import jax
import jax.numpy as jnp
from jax.experimental import pallas as pl
from jax.experimental.pallas import tpu as pltpu

NUM_CLASSES = 100


def _linear_probe_kernel(x_ref, we_ref, be_ref, wp_ref, bp_ref, o_ref):
    # x_ref:  (Bblk, N, Pd)  bf16  patchified image tile (all patches of the tile)
    # we_ref: (Pd, D)        bf16  encoder stand-in (patch embed) weight
    # be_ref: (1, D)         f32   patch embed bias
    # wp_ref: (D, Cpad)      bf16  linear probe weight (in, out), class-padded to 128
    # bp_ref: (1, Cpad)      f32   linear probe bias, class-padded to 128
    # o_ref:  (Bblk, Cpad)   f32   logits (lane-dense, unmasked stores)
    #
    # x.mean(dim=1) taken BEFORE the (linear) patch embed: exact by linearity,
    # cuts MXU flops by N and removes any (Bblk, N, D) f32 intermediate.
    pooled_x = jnp.mean(x_ref[...].astype(jnp.float32), axis=1)        # (Bblk, Pd)

    # Encoder stand-in on the pooled patches; bias added once after the mean.
    feat = jnp.dot(pooled_x.astype(we_ref.dtype), we_ref[...],
                   preferred_element_type=jnp.float32) + be_ref[...]   # (Bblk, D)

    # linear_layer(feat) on the class-padded, lane-dense probe weight.
    logits = jnp.dot(feat.astype(wp_ref.dtype), wp_ref[...],
                     preferred_element_type=jnp.float32) + bp_ref[...]  # (Bblk, Cpad)
    o_ref[...] = logits


def prepare_params(w_embed, b_embed, w_probe_t, b_probe):
    """One-time parameter prep (bf16 cast + class padding), out of the hot path."""
    D = w_embed.shape[1]
    cls = w_probe_t.shape[1]
    cls_pad = ((cls + 127) // 128) * 128        # lane-dense class dim
    we = w_embed.astype(jnp.bfloat16)
    be = b_embed.reshape(1, D).astype(jnp.float32)
    # Padded cols are zero -> padded logits = padded bias = 0; sliced off later.
    wp = jnp.zeros((D, cls_pad), jnp.bfloat16).at[:, :cls].set(
        w_probe_t.astype(jnp.bfloat16))
    bp = jnp.zeros((1, cls_pad), jnp.float32).at[:, :cls].set(
        b_probe.astype(jnp.float32))
    return we, be, wp, bp


@functools.partial(jax.jit, static_argnames=("patch", "b_block", "num_classes"))
def linear_probe_forward(x_nchw, we, be, wp, bp, *, patch=8, b_block=8,
                         num_classes=NUM_CLASSES):
    B, C, H, W = x_nchw.shape
    P = patch
    nh, nw = H // P, W // P
    N = nh * nw
    Pd = C * P * P
    D = we.shape[1]
    CLS_PAD = wp.shape[1]

    assert B % b_block == 0 and b_block % 8 == 0, "demo shapes must tile exactly"
    assert N % 16 == 0, "patch axis should be a multiple of 16 (bf16 packing)"
    assert num_classes <= CLS_PAD

    # Patchify NCHW -> (B, N, C*P*P) and cast to bf16. allow_input_fusion below
    # lets XLA fuse this producer into the pallas_call operand instead of
    # materialising an extra HBM copy of x.
    xp = x_nchw.reshape(B, C, nh, P, nw, P)
    xp = xp.transpose(0, 2, 4, 1, 3, 5).reshape(B, N, Pd).astype(jnp.bfloat16)

    out = pl.pallas_call(
        _linear_probe_kernel,
        out_shape=jax.ShapeDtypeStruct((B, CLS_PAD), jnp.float32),
        grid_spec=pltpu.PrefetchScalarGridSpec(
            num_scalar_prefetch=0,
            grid=(B // b_block,),                     # batch tiles only
            in_specs=[
                pl.BlockSpec((b_block, N, Pd), lambda b: (b, 0, 0)),
                # Resident weights/biases: constant block index, single-buffered.
                pl.BlockSpec((Pd, D), lambda b: (0, 0),
                             pipeline_mode=pl.Buffered(1)),
                pl.BlockSpec((1, D), lambda b: (0, 0),
                             pipeline_mode=pl.Buffered(1)),
                pl.BlockSpec((D, CLS_PAD), lambda b: (0, 0),
                             pipeline_mode=pl.Buffered(1)),
                pl.BlockSpec((1, CLS_PAD), lambda b: (0, 0),
                             pipeline_mode=pl.Buffered(1)),
            ],
            out_specs=pl.BlockSpec((b_block, CLS_PAD), lambda b: (b, 0)),
        ),
        compiler_params=pltpu.CompilerParams(
            dimension_semantics=("parallel",),        # megacore sharding on v7x
            vmem_limit_bytes=48 * 1024 * 1024,        # raise v5e's 16 MiB default; v7x headroom
            allow_input_fusion=[True, False, False, False, False],
        ),
    )(xp, we, be, wp, bp)

    return out[:, :num_classes]


def _reference(x_nchw, w_embed, b_embed, w_probe_t, b_probe, patch=8):
    # Pure-JAX f32 reference in the module's op order:
    #   encoder(x) per patch -> mean over patches -> linear probe.
    B, C, H, W = x_nchw.shape
    P = patch
    nh, nw = H // P, W // P
    xp = x_nchw.reshape(B, C, nh, P, nw, P)
    xp = xp.transpose(0, 2, 4, 1, 3, 5).reshape(B, nh * nw, C * P * P)
    feat = jnp.einsum("bnp,pd->bnd", xp, w_embed) + b_embed
    pooled = feat.mean(axis=1)
    return pooled @ w_probe_t + b_probe


if __name__ == "__main__":
    key = jax.random.PRNGKey(0)
    k_x, k_we, k_be, k_wp, k_bp = jax.random.split(key, 5)

    # Small demo shapes consistent with the forward pass.
    # B=16 with b_block=8 -> batch-parallel grid extent 2 (uses both v7x TCs).
    B, C, H, W = 16, 4, 32, 32    # NCHW image input
    P = 8                         # patch size -> N = 16 patches (multiple of 16)
    D = 128                       # encoder.embed_dim
    Pd = C * P * P                # 256

    x = jax.random.normal(k_x, (B, C, H, W), dtype=jnp.float32)
    w_embed = jax.random.normal(k_we, (Pd, D), dtype=jnp.float32) * 0.02
    b_embed = jax.random.normal(k_be, (D,), dtype=jnp.float32) * 0.02
    # nn.Linear(embed_dim, num_classes): torch stores (out, in); we use (in, out).
    w_probe_t = jax.random.normal(k_wp, (D, NUM_CLASSES), dtype=jnp.float32) * 0.02
    b_probe = jax.random.normal(k_bp, (NUM_CLASSES,), dtype=jnp.float32) * 0.02

    params = prepare_params(w_embed, b_embed, w_probe_t, b_probe)  # one-time prep
    out = linear_probe_forward(x, *params, patch=P, b_block=8,
                               num_classes=NUM_CLASSES)
    out = jax.block_until_ready(out)

    ref = _reference(x, w_embed, b_embed, w_probe_t, b_probe, patch=P)
    assert out.shape == (B, NUM_CLASSES)
    max_err = float(jnp.max(jnp.abs(out - ref)))
    assert jnp.allclose(out, ref, atol=5e-3, rtol=5e-3), max_err

    print("KERNEL_OK")
</pallas_src>

<mosaic_0001>
module attributes {stable_mosaic.version = 11 : i64} {
  func.func @_linear_probe_kernel(%arg0: i32, %arg1: memref<8x16x256xbf16, #tpu.memory_space<vmem>>, %arg2: memref<256x128xbf16, #tpu.memory_space<vmem>>, %arg3: memref<1x128xf32, #tpu.memory_space<vmem>>, %arg4: memref<128x128xbf16, #tpu.memory_space<vmem>>, %arg5: memref<1x128xf32, #tpu.memory_space<vmem>>, %arg6: memref<8x128xf32, #tpu.memory_space<vmem>>) attributes {dimension_semantics = [#tpu.dimension_semantics<parallel>], iteration_bounds = array<i64: 2>, scalar_prefetch = 0 : i64, scratch_operands = 0 : i64, tpu.core_type = #tpu.core_type<tc>, window_params = [{transform_indices = @transform_0, window_bounds = array<i64: 8, 16, 256>}, {pipeline_mode = #tpu.pipeline_mode<synchronous>, transform_indices = @transform_1, window_bounds = array<i64: 256, 128>}, {pipeline_mode = #tpu.pipeline_mode<synchronous>, transform_indices = @transform_2, window_bounds = array<i64: 1, 128>}, {pipeline_mode = #tpu.pipeline_mode<synchronous>, transform_indices = @transform_3, window_bounds = array<i64: 128, 128>}, {pipeline_mode = #tpu.pipeline_mode<synchronous>, transform_indices = @transform_4, window_bounds = array<i64: 1, 128>}, {transform_indices = @transform_5, window_bounds = array<i64: 8, 128>}]} {
    %c0 = arith.constant 0 : index
    %c0_0 = arith.constant 0 : index
    %c0_1 = arith.constant 0 : index
    %0 = vector.load %arg1[%c0, %c0_0, %c0_1] : memref<8x16x256xbf16, #tpu.memory_space<vmem>>, vector<8x16x256xbf16>
    %1 = arith.extf %0 : vector<8x16x256xbf16> to vector<8x16x256xf32>
    %cst = arith.constant dense<0.000000e+00> : vector<8x256xf32>
    %2 = vector.multi_reduction <add>, %1, %cst [1] : vector<8x16x256xf32> to vector<8x256xf32>
    %cst_2 = arith.constant 1.600000e+01 : f32
    %3 = vector.broadcast %cst_2 : f32 to vector<8x256xf32>
    %4 = arith.divf %2, %3 : vector<8x256xf32>
    %5 = arith.truncf %4 : vector<8x256xf32> to vector<8x256xbf16>
    %c0_3 = arith.constant 0 : index
    %c0_4 = arith.constant 0 : index
    %6 = vector.load %arg2[%c0_3, %c0_4] : memref<256x128xbf16, #tpu.memory_space<vmem>>, vector<256x128xbf16>
    %cst_5 = arith.constant dense<0.000000e+00> : vector<8x128xf32>
    %7 = tpu.matmul %5, %6, %cst_5 {dimension_numbers = #tpu.dot_dimension_numbers<[1], [0], [0], [1], [0, 0, 1, 1], [], []>} : vector<8x256xbf16>, vector<256x128xbf16>, vector<8x128xf32> -> vector<8x128xf32>
    %c0_6 = arith.constant 0 : index
    %c0_7 = arith.constant 0 : index
    %8 = vector.load %arg3[%c0_6, %c0_7] : memref<1x128xf32, #tpu.memory_space<vmem>>, vector<1x128xf32>
    %9 = vector.broadcast %8 : vector<1x128xf32> to vector<8x128xf32>
    %10 = arith.addf %7, %9 : vector<8x128xf32>
    %11 = arith.truncf %10 : vector<8x128xf32> to vector<8x128xbf16>
    %c0_8 = arith.constant 0 : index
    %c0_9 = arith.constant 0 : index
    %12 = vector.load %arg4[%c0_8, %c0_9] : memref<128x128xbf16, #tpu.memory_space<vmem>>, vector<128x128xbf16>
    %cst_10 = arith.constant dense<0.000000e+00> : vector<8x128xf32>
    %13 = tpu.matmul %11, %12, %cst_10 {dimension_numbers = #tpu.dot_dimension_numbers<[1], [0], [0], [1], [0, 0, 1, 1], [], []>} : vector<8x128xbf16>, vector<128x128xbf16>, vector<8x128xf32> -> vector<8x128xf32>
    %c0_11 = arith.constant 0 : index
    %c0_12 = arith.constant 0 : index
    %14 = vector.load %arg5[%c0_11, %c0_12] : memref<1x128xf32, #tpu.memory_space<vmem>>, vector<1x128xf32>
    %15 = vector.broadcast %14 : vector<1x128xf32> to vector<8x128xf32>
    %16 = arith.addf %13, %15 : vector<8x128xf32>
    %c0_13 = arith.constant 0 : index
    %c0_14 = arith.constant 0 : index
    %17 = vector.load %arg6[%c0_13, %c0_14] : memref<8x128xf32, #tpu.memory_space<vmem>>, vector<8x128xf32>
    tpu.vector_store %arg6[%c0_13, %c0_14], %16 {strides = array<i32>} : memref<8x128xf32, #tpu.memory_space<vmem>>, vector<8x128xf32>,
    return
  }
  func.func @transform_0(%arg0: i32) -> (i32, i32, i32) {
    %c0_i32 = arith.constant 0 : i32
    %c0_i32_0 = arith.constant 0 : i32
    %c0_i32_1 = arith.constant 0 : i32
    return %arg0, %c0_i32, %c0_i32_0 : i32, i32, i32
  }
  func.func @transform_1(%arg0: i32) -> (i32, i32) {
    %c0_i32 = arith.constant 0 : i32
    %c0_i32_0 = arith.constant 0 : i32
    %c0_i32_1 = arith.constant 0 : i32
    return %c0_i32, %c0_i32_0 : i32, i32
  }
  func.func @transform_2(%arg0: i32) -> (i32, i32) {
    %c0_i32 = arith.constant 0 : i32
    %c0_i32_0 = arith.constant 0 : i32
    %c0_i32_1 = arith.constant 0 : i32
    return %c0_i32, %c0_i32_0 : i32, i32
  }
  func.func @transform_3(%arg0: i32) -> (i32, i32) {
    %c0_i32 = arith.constant 0 : i32
    %c0_i32_0 = arith.constant 0 : i32
    %c0_i32_1 = arith.constant 0 : i32
    return %c0_i32, %c0_i32_0 : i32, i32
  }
  func.func @transform_4(%arg0: i32) -> (i32, i32) {
    %c0_i32 = arith.constant 0 : i32
    %c0_i32_0 = arith.constant 0 : i32
    %c0_i32_1 = arith.constant 0 : i32
    return %c0_i32, %c0_i32_0 : i32, i32
  }
  func.func @transform_5(%arg0: i32) -> (i32, i32) {
    %c0_i32 = arith.constant 0 : i32
    %c0_i32_0 = arith.constant 0 : i32
    return %arg0, %c0_i32 : i32, i32
  }
}

</mosaic_0001>

<bundles_post_ra>
// kernel: linear_probe_forward.1
= control target key start
LH: loop header
LB: loop body
LE: loop exit
PB: predicated region body
PF: predicated region fallthrough
CT: control target
= control target key end

     0   :  { %10 = vsyncpa [#allocation3], 0  ;;  %s1406_s0 = inlined_call_operand.vmem [shape: bf16[16,16,256], index: 0, kind: input, shape index: {}]   ;;  %s1407_s1 = inlined_call_operand.vmem [shape: bf16[256,128], index: 1, kind: input, shape index: {}]   ;;  %s1408_s2 = inlined_call_operand.vmem [shape: f32[1,128], index: 2, kind: input, shape index: {}]   ;;  %s1409_s3 = inlined_call_operand.vmem [shape: bf16[128,128], index: 3, kind: input, shape index: {}]   ;;  %s1410_s4 = inlined_call_operand.vmem [shape: f32[1,128], index: 4, kind: input, shape index: {}]   ;;  %s1411_s5 = inlined_call_operand.hbm [shape: f32[16,128], index: 5, kind: output, shape index: {}]  }
   0x1   :  { %12 = vsyncpa [#allocation3 + $0x1], 0  ;;  %s1092_s18 = smov 0   ;;  %s1094_s19 = smov 0  }
   0x2   :  { %s1096_s20 = smov 0   ;;  %s1098_s21 = smov 0  }
   0x3 LB: > { %s1113_s22 = sadd.s32 4294967295, %s1057_s21   ;;  %s840_s23 = sadd.s32 4294967294, %s1057_s21   ;;  %s1057_s21 = sphi %s1098_s21, %s1421_s21   ;;  %s1053_s20 = sphi %s1096_s20, %s1420_s20   ;;  %s1049_s19 = sphi %s1094_s19, %s1419_s19   ;;  %s1045_s18 = sphi %s1092_s18, %s1418_s18  }
   0x4   : > { %s1117_s24 = sadd.s32 1, %s1057_s21   ;;  %s135_s25 = sadd.s32 1, %s1053_s20 }
   0x5   : > { %s132_s26 = ssub.s32 %s1057_s21, %s1117_s24  ;;  %p145_p0 = scmp.ne.s32.totalorder %s1053_s20, %s1049_s19 }
   0x6   : > { %p133_p1 = scmp.eq.s32.totalorder %s132_s26, 0  ;;  %p146_p2 = scmp.eq.s32.totalorder %s1113_s22, 1 }
   0x7   : > { %p151_p3 = scmp.ne.s32.totalorder %s1049_s19, %s1045_s18  ;;  %p152_p4 = scmp.eq.s32.totalorder %s840_s23, 1 }
   0x8   : > { %s1128_s27 = scalar_select %p133_p1, %s1053_s20, %s135_s25  }
   0x9   : > { %p1130_p5 = por %p146_p2, %p145_p0  ;;  %p1134_p6 = por %p152_p4, %p151_p3 }
   0xa   : > { %p843_p7 = scmp.ge.s32.totalorder %s1057_s21, 1  ;;  %p192_p8 = scmp.lt.s32.totalorder %s1057_s21, 3 }
   0xc   : > { %p193_p9 = pnand %p843_p7, %p192_p8 }
   0xd   : > { %v971_v0 = vld [vmem:[%s1407_s1 + $0x40] sm:$0xff] (!%p193_p9)   ;;  %s845_s7 = sshll.u32 (!%p193_p9), %s1113_s22, 3  ;;  %v973_v2 = vld [vmem:[%s1407_s1 + $0x48] sm:$0xff] (!%p193_p9)   ;;  %v975_v4 = vld [vmem:[%s1407_s1 + $0x50] sm:$0xff] (!%p193_p9)   ;;  %v1059_v9 = vmov (!%p193_p9), 0.0   ;;  %vm493_vm0 = vcmask (!%p193_p9), 1041409  }
   0xe   : > { %196 = sbr.rel (%p193_p9) target bundleno = 534 (0x216), region = 40  ;;  %v972_v1 = vld [vmem:[%s1407_s1] sm:$0xff] (!%p193_p9)   ;;  %879 = vmatprep.subr.bf16.mxu0 (!%p193_p9), %v971_v0  ;;  %p222_p10 = scmp.lt.s32.totalorder (!%p193_p9), %s845_s7, 15  ;;  %v974_v3 = vld [vmem:[%s1407_s1 + $0x8] sm:$0xff] (!%p193_p9)   ;;  %v976_v5 = vld [vmem:[%s1407_s1 + $0x10] sm:$0xff] (!%p193_p9)   ;;  %910 = vmatprep.subr.bf16.mxu1 (!%p193_p9), %v1059_v9  ;;  %vm495_vm1 = vcmask (!%p193_p9), 1042434  }
   0xf   : > { %880 = vmatpush3.bf16.msra.mxu0 (!%p193_p9), %v972_v1  ;;  %v977_v6 = vld [vmem:[%s1407_s1 + $0x58] sm:$0xff] (!%p193_p9)   ;;  %v979_v8 = vld [vmem:[%s1407_s1 + $0x60] sm:$0xff] (!%p193_p9)   ;;  %v981_v11 = vld [vmem:[%s1407_s1 + $0x68] sm:$0xff] (!%p193_p9)   ;;  %vm497_vm2 = vcmask (!%p193_p9), 1043459   ;;  %vm499_vm3 = vcmask (!%p193_p9), 1044484   ;;  %vm501_vm4 = vcmask (!%p193_p9), 1045509  }
  0x10   : > { %881 = vmatprep.subr.bf16.mxu0 (!%p193_p9), %v973_v2  ;;  %v978_v7 = vld [vmem:[%s1407_s1 + $0x18] sm:$0xff] (!%p193_p9)   ;;  %v980_v10 = vld [vmem:[%s1407_s1 + $0x20] sm:$0xff] (!%p193_p9)   ;;  %v982_v15 = vld [vmem:[%s1407_s1 + $0x28] sm:$0xff] (!%p193_p9)   ;;  %vm503_vm5 = vcmask (!%p193_p9), 1046534   ;;  %vm505_vm6 = vcmask (!%p193_p9), 1047559   ;;  %vm1060_vm7 = vmmov (!%p193_p9), 0  }
  0x11   : > { %v983_v23 = vld [vmem:[%s1407_s1 + $0x70] sm:$0xff] (!%p193_p9)   ;;  %v987_v55 = vld [vmem:[%s1409_s3] sm:$0xff] (!%p193_p9)   ;;  %v985_v56 = vld [vmem:[%s1407_s1 + $0x78] sm:$0xff] (!%p193_p9)   ;;  %926 = vmatprep.mubr.msk.bf16.mxu1 (!%p193_p9), %vm1060_vm7, %v1059_v9  ;;  %s218_s13 = sand.u32 (!%p193_p9), 1, %s1049_s19   ;;  %s875_s16 = sshll.u32 (!%p193_p9), %s1113_s22, 7 }
  0x12   : > { %v984_v45 = vld [vmem:[%s1407_s1 + $0x30] sm:$0xff] (!%p193_p9)   ;;  %911 = vmatpush3.bf16.msra.mxu1 (!%p193_p9), %v987_v55  ;;  %v988_v1 = vld [vmem:[%s1409_s3 + $0x8] sm:$0xff] (!%p193_p9)   ;;  %s1364_s30 = scalar_lea.hbm (!%p193_p9), %s1411_s5, %s875_s16  ;;  %s768_s6 = scalar_lea.sflag (!%p193_p9), [#allocation3], %s218_s13 }
  0x13   : > { %882 = vmatpush3.bf16.msra.mxu0 (!%p193_p9), %v974_v3  ;;  %912 = vmatprep.subr.bf16.mxu1 (!%p193_p9), %v1059_v9  ;;  %s1061_s8 = smov (!%p193_p9), [#allocation2]  }
  0x14   : > { %883 = vmatprep.subr.bf16.mxu0 (!%p193_p9), %v975_v4  ;;  %s999_s9 = sshll.u32 (!%p193_p9), %s1061_s8, 4  ;;  %s1000_s9 = int_to_ptr.vmem [resolvable:$false] %s999_s9 }
  0x15   : > { %s1423_s7 = smov (!%p222_p10, %s845_s7), 15  ;;  %s1001_s10 = scalar_lea.vmem %s1000_s9, 256 }
  0x16   : > { %s878_s26 = sshll.u32 %s1423_s7, 4  ;;  %913 = vmatpush3.bf16.msra.mxu1 %v988_v1  ;;  %s844_s7 = sshll.u32 %s218_s13, 3 }
  0x17   : > { %884 = vmatpush3.bf16.msra.mxu0 %v976_v5  ;;  %s1172_s12 = scalar_lea.vmem %s1406_s0, %s878_s26  ;;  %914 = vmatprep.subr.bf16.mxu1 %v1059_v9  ;;  %s220_s17 = scalar_lea.vmem [#allocation2], %s844_s7 }
  0x18   : > { %885 = vmatprep.subr.bf16.mxu0 %v977_v6  ;;  %v1181_v12 = vld [vmem:[%s1172_s12] sm:$0xff]  ;;  %v1184_v13 = vld [vmem:[%s1172_s12 + $0x8] sm:$0xff]  ;;  %v1187_v14 = vld [vmem:[%s1172_s12 + $0x10] sm:$0xff]  ;;  %s781_s23 = sshll.u32 %s220_s17, 4  ;;  %s1366_s23 = int_to_ptr.vmem [resolvable:$true] %s781_s23 }
  0x19   : > { %v1193_v16 = vld [vmem:[%s1172_s12 + $0x18] sm:$0xff]  ;;  %v1196_v17 = vld [vmem:[%s1172_s12 + $0x20] sm:$0xff]  ;;  %v1199_v18 = vld [vmem:[%s1172_s12 + $0x28] sm:$0xff]  ;;  %v245_v19 = vunpack.c.l.bf16 %v1181_v12  ;;  %v246_v20 = vunpack.c.h.bf16 %v1181_v12  ;;  %v247_v21 = vunpack.c.l.bf16 %v1184_v13  ;;  %v248_v22 = vunpack.c.h.bf16 %v1184_v13  ;;  %s995_s22 = scalar_lea.vmem %s1366_s23, 128  ;;  %p1002_p0 = scmp.lt.s32.totalorder %s1366_s23, %s1000_s9 }
  0x1a   : > { %v1209_v24 = vld [vmem:[%s1172_s12 + $0x30] sm:$0xff]  ;;  %v1212_v25 = vld [vmem:[%s1172_s12 + $0x38] sm:$0xff]  ;;  %v1215_v26 = vld [vmem:[%s1172_s12 + $0x40] sm:$0xff]  ;;  %v249_v27 = vunpack.c.l.bf16 %v1187_v14  ;;  %v250_v28 = vunpack.c.h.bf16 %v1187_v14  ;;  %v251_v29 = vunpack.c.l.bf16 %v1193_v16  ;;  %v252_v30 = vunpack.c.h.bf16 %v1193_v16  ;;  %p996_p11 = scmp.ne.s32.totalorder %s1366_s23, %s995_s22  ;;  %p1003_p1 = scmp.lt.s32.totalorder %s1001_s10, %s995_s22 }
  0x1b   : > { %886 = vmatpush3.bf16.msra.mxu0 %v978_v7  ;;  %v1222_v31 = vld [vmem:[%s1172_s12 + $0x48] sm:$0xff]  ;;  %v1225_v32 = vld [vmem:[%s1172_s12 + $0x50] sm:$0xff]  ;;  %v1228_v33 = vld [vmem:[%s1172_s12 + $0x58] sm:$0xff]  ;;  %v253_v34 = vunpack.c.l.bf16 %v1196_v17  ;;  %v254_v35 = vunpack.c.h.bf16 %v1196_v17  ;;  %v255_v36 = vunpack.c.l.bf16 %v1199_v18  ;;  %v256_v37 = vunpack.c.h.bf16 %v1199_v18 }
  0x1c   : > { %887 = vmatprep.subr.bf16.mxu0 %v979_v8  ;;  %v1235_v38 = vld [vmem:[%s1172_s12 + $0x60] sm:$0xff]  ;;  %v1238_v39 = vld [vmem:[%s1172_s12 + $0x68] sm:$0xff]  ;;  %v1241_v40 = vld [vmem:[%s1172_s12 + $0x70] sm:$0xff]  ;;  %v257_v41 = vunpack.c.l.bf16 %v1209_v24  ;;  %v258_v42 = vunpack.c.h.bf16 %v1209_v24  ;;  %v259_v43 = vunpack.c.l.bf16 %v1212_v25  ;;  %v260_v44 = vunpack.c.h.bf16 %v1212_v25  ;;  %p997_p12 = pnand %p996_p11, %p1130_p5  ;;  %p1004_p2 = por %p1003_p1, %p1002_p0 }
  0x1d   : > { %v1251_v46 = vld [vmem:[%s1172_s12 + $0x78] sm:$0xff]  ;;  %v261_v47 = vunpack.c.l.bf16 %v1215_v26  ;;  %v262_v48 = vunpack.c.h.bf16 %v1215_v26  ;;  %v263_v49 = vunpack.c.l.bf16 %v1222_v31  ;;  %v264_v50 = vunpack.c.h.bf16 %v1222_v31 }
  0x1e   : > { %v265_v51 = vunpack.c.l.bf16 %v1225_v32  ;;  %v266_v52 = vunpack.c.h.bf16 %v1225_v32  ;;  %v267_v53 = vunpack.c.l.bf16 %v1228_v33  ;;  %v268_v54 = vunpack.c.h.bf16 %v1228_v33  ;;  %p998_p13 = pneg %p997_p12 }
  0x1f   : > { %888 = vmatpush3.bf16.msra.mxu0 %v980_v10  ;;  %v270_v58 = vunpack.c.h.bf16 %v1235_v38  ;;  %v272_v60 = vunpack.c.h.bf16 %v1238_v39  ;;  %v274_v62 = vunpack.c.h.bf16 %v1241_v40  ;;  %v276_v0 = vunpack.c.h.bf16 %v1251_v46 }
  0x20   : > { %889 = vmatprep.subr.bf16.mxu0 %v981_v11  ;;  %v284_v2 = vadd.f32 %v248_v22, %v246_v20  ;;  %v298_v3 = vadd.f32 %v252_v30, %v250_v28  ;;  %v312_v4 = vadd.f32 %v256_v37, %v254_v35  ;;  %v326_v5 = vadd.f32 %v260_v44, %v258_v42  ;;  %v986_v11 = vld [vmem:[%s1407_s1 + $0x38] sm:$0xff]   ;;  %v989_v20 = vld [vmem:[%s1409_s3 + $0x10] sm:$0xff]   ;;  %p1005_p3 = pnand %p1004_p2, %p998_p13 }
  0x21   : > { %v340_v6 = vadd.f32 %v264_v50, %v262_v48  ;;  %v354_v7 = vadd.f32 %v268_v54, %v266_v52  ;;  %v368_v8 = vadd.f32 %v272_v60, %v270_v58  ;;  %v382_v10 = vadd.f32 %v276_v0, %v274_v62  ;;  %915 = vmatpush3.bf16.msra.mxu1 %v989_v20 }
  0x22   : > { %v313_v55 = vrot.slane %v312_v4, 4  ;;  %v327_v63 = vrot.slane %v326_v5, 4  ;;  %916 = vmatprep.subr.bf16.mxu1 %v1059_v9  ;;  %v319_v12 = vadd.f32 %v259_v43, %v257_v41  ;;  %v333_v13 = vadd.f32 %v263_v49, %v261_v47 }
  0x23   : > { %890 = vmatpush3.bf16.msra.mxu0 %v982_v15  ;;  %v285_v15 = vrot.slane %v284_v2, 4  ;;  %v341_v22 = vrot.slane %v340_v6, 4  ;;  %v355_v28 = vrot.slane %v354_v7, 4  ;;  %v369_v30 = vrot.slane %v368_v8, 4 }
  0x24   : > { %891 = vmatprep.subr.bf16.mxu0 %v983_v23  ;;  %v299_v23 = vrot.slane %v298_v3, 4  ;;  %v383_v35 = vrot.slane %v382_v10, 4  ;;  %v314_v44 = vadd.f32 %v313_v55, %v312_v4  ;;  %v347_v14 = vadd.f32 %v267_v53, %v265_v51 }
  0x25   : > { %v286_v37 = vadd.f32 %v285_v15, %v284_v2  ;;  %v342_v48 = vadd.f32 %v341_v22, %v340_v6  ;;  %v356_v50 = vadd.f32 %v355_v28, %v354_v7  ;;  %v370_v52 = vadd.f32 %v369_v30, %v368_v8  ;;  %v991_v30 = vld [vmem:[%s1409_s3 + $0x20] sm:$0xff]  }
  0x26   : > { %v300_v42 = vadd.f32 %v299_v23, %v298_v3  ;;  %v384_v54 = vadd.f32 %v383_v35, %v382_v10  ;;  %v315_v62 = vrot.slane %v314_v44, 2  ;;  %v320_v24 = vrot.slane %v319_v12, 4 }
  0x27   : > { %892 = vmatpush3.bf16.msra.mxu0 %v984_v45  ;;  %v328_v45 = vadd.f32 %v327_v63, %v326_v5  ;;  %v287_v58 = vrot.slane %v286_v37, 2  ;;  %v343_v0 = vrot.slane %v342_v48, 2  ;;  %v357_v61 = vrot.slane %v356_v50, 2  ;;  %v990_v63 = vld [vmem:[%s1409_s3 + $0x18] sm:$0xff]  }
  0x28   : > { %893 = vmatprep.subr.bf16.mxu0 %v985_v56  ;;  %v301_v60 = vrot.slane %v300_v42, 2  ;;  %v371_v59 = vrot.slane %v370_v52, 2  ;;  %v385_v57 = vrot.slane %v384_v54, 2  ;;  %v316_v3 = vadd.f32 %v315_v62, %v314_v44  ;;  %917 = vmatpush3.bf16.msra.mxu1 %v990_v63 }
  0x29   : > { %v329_v56 = vrot.slane %v328_v45, 2  ;;  %v288_v1 = vadd.f32 %v287_v58, %v286_v37  ;;  %v344_v5 = vadd.f32 %v343_v0, %v342_v48  ;;  %v358_v6 = vadd.f32 %v357_v61, %v356_v50  ;;  %918 = vmatprep.subr.bf16.mxu1 %v1059_v9  ;;  %v992_v0 = vld [vmem:[%s1409_s3 + $0x28] sm:$0xff]  }
  0x2a   : > { %v302_v2 = vadd.f32 %v301_v60, %v300_v42  ;;  %v372_v7 = vadd.f32 %v371_v59, %v370_v52  ;;  %v386_v8 = vadd.f32 %v385_v57, %v384_v54  ;;  %v317_v15 = vrot.slane %v316_v3, 1 }
  0x2b   : > { %894 = vmatpush3.bf16.msra.mxu0 %v986_v11  ;;  %v330_v4 = vadd.f32 %v329_v56, %v328_v45  ;;  %v289_v10 = vrot.slane %v288_v1, 1  ;;  %v345_v55 = vrot.slane %v344_v5, 1  ;;  %v359_v20 = vrot.slane %v358_v6, 1 }
  0x2c   : > { %v303_v11 = vrot.slane %v302_v2, 1  ;;  %v373_v22 = vrot.slane %v372_v7, 1  ;;  %v387_v28 = vrot.slane %v386_v8, 1  ;;  %v318_v59 = vadd.f32 %v317_v15, %v316_v3  ;;  %919 = vmatpush3.bf16.msra.mxu1 %v991_v30 }
  0x2d   : > { %v331_v23 = vrot.slane %v330_v4, 1  ;;  %v290_v35 = vadd.f32 %v289_v10, %v288_v1  ;;  %v346_v37 = vadd.f32 %v345_v55, %v344_v5  ;;  %v360_v42 = vadd.f32 %v359_v20, %v358_v6  ;;  %920 = vmatprep.subr.bf16.mxu1 %v1059_v9 }
  0x2e   : > { %v304_v61 = vadd.f32 %v303_v11, %v302_v2  ;;  %v374_v44 = vadd.f32 %v373_v22, %v372_v7  ;;  %v388_v45 = vadd.f32 %v387_v28, %v386_v8  ;;  %v395_v52 = vmul.f32 0.0625, %v318_v59 }
  0x2f   : > { %v332_v57 = vadd.f32 %v331_v23, %v330_v4  ;;  %v391_v48 = vmul.f32 0.0625, %v290_v35  ;;  %v399_v58 = vmul.f32 0.0625, %v346_v37  ;;  %v401_v60 = vmul.f32 0.0625, %v360_v42 }
  0x30   : > { %v393_v50 = vmul.f32 0.0625, %v304_v61  ;;  %v403_v62 = vmul.f32 0.0625, %v374_v44  ;;  %v405_v56 = vmul.f32 0.0625, %v388_v45  ;;  %v411_v2 = vpack.c.bf16 %v395_v52, %v395_v52  ;;  %921 = vmatpush3.bf16.msra.mxu1 %v992_v0 }
  0x31   : > { %v397_v54 = vmul.f32 0.0625, %v332_v57  ;;  %v407_v63 = vpack.c.bf16 %v391_v48, %v391_v48  ;;  %v415_v4 = vpack.c.bf16 %v399_v58, %v399_v58  ;;  %v417_v5 = vpack.c.bf16 %v401_v60, %v401_v60  ;;  %922 = vmatprep.subr.bf16.mxu1 %v1059_v9 }
  0x32   : > { %v409_v1 = vpack.c.bf16 %v393_v50, %v393_v50  ;;  %v419_v6 = vpack.c.bf16 %v403_v62, %v403_v62  ;;  %v421_v7 = vpack.c.bf16 %v405_v56, %v405_v56  ;;  %v482_v11 = vunpack.c.l.b16 %v411_v2 }
  0x33   : > { %v413_v3 = vpack.c.bf16 %v397_v54, %v397_v54  ;;  %v478_v8 = vunpack.c.l.b16 %v407_v63  ;;  %v486_v23 = vunpack.c.l.b16 %v415_v4  ;;  %v488_v55 = vunpack.c.l.b16 %v417_v5 }
  0x34   : > { %v480_v10 = vunpack.c.l.b16 %v409_v1  ;;  %v490_v20 = vunpack.c.l.b16 %v419_v6  ;;  %v492_v22 = vunpack.c.l.b16 %v421_v7  ;;  %v277_v30 = vadd.f32 %v247_v21, %v245_v19 }
  0x35   : > { %v484_v15 = vunpack.c.l.b16 %v413_v3  ;;  %v291_v35 = vadd.f32 %v251_v29, %v249_v27  ;;  %v305_v61 = vadd.f32 %v255_v36, %v253_v34  ;;  %v334_v25 = vrot.slane %v333_v13, 4 }
  0x36   : > { %v507_v28 = vsel %vm493_vm0, %v480_v10, %v478_v8  ;;  %v278_v17 = vrot.slane %v277_v30, 4  ;;  %v348_v27 = vrot.slane %v347_v14, 4  ;;  %v321_v36 = vadd.f32 %v320_v24, %v319_v12 }
  0x37   : > { %v508_v59 = vsel %vm495_vm1, %v482_v11, %v507_v28  ;;  %v292_v18 = vrot.slane %v291_v35, 4  ;;  %v306_v19 = vrot.slane %v305_v61, 4  ;;  %v335_v33 = vadd.f32 %v334_v25, %v333_v13 }
  0x38   : > { %v509_v16 = vsel %vm497_vm2, %v484_v15, %v508_v59  ;;  %v279_v29 = vadd.f32 %v278_v17, %v277_v30  ;;  %v349_v41 = vadd.f32 %v348_v27, %v347_v14  ;;  %v322_v57 = vrot.slane %v321_v36, 2 }
  0x39   : > { %v510_v21 = vsel %vm499_vm3, %v486_v23, %v509_v16  ;;  %v293_v31 = vadd.f32 %v292_v18, %v291_v35  ;;  %v307_v34 = vadd.f32 %v306_v19, %v305_v61  ;;  %v336_v37 = vrot.slane %v335_v33, 2 }
  0x3a   : > { %v511_v26 = vsel %vm501_vm4, %v488_v55, %v510_v21  ;;  %v280_v47 = vrot.slane %v279_v29, 2  ;;  %v350_v42 = vrot.slane %v349_v41, 2  ;;  %v1414_v50 = vunpack.c.l.bf16 %v1235_v38 }
  0x3b   : > { %v512_v32 = vsel %vm503_vm5, %v490_v20, %v511_v26  ;;  %v294_v49 = vrot.slane %v293_v31, 2  ;;  %v308_v51 = vrot.slane %v307_v34, 2  ;;  %v1415_v52 = vunpack.c.l.bf16 %v1238_v39 }
  0x3c   : > { %v513_v43 = vsel %vm505_vm6, %v492_v22, %v512_v32  ;;  %v281_v44 = vadd.f32 %v280_v47, %v279_v29  ;;  %v323_v58 = vadd.f32 %v322_v57, %v321_v36  ;;  %v337_v60 = vadd.f32 %v336_v37, %v335_v33 }
  0x3d   : > { %v515_v53 = vpack.c.b16 %v513_v43, %v513_v43  ;;  %v295_v45 = vadd.f32 %v294_v49, %v293_v31  ;;  %v309_v48 = vadd.f32 %v308_v51, %v307_v34  ;;  %v361_v54 = vadd.f32 %v1415_v52, %v1414_v50 }
  0x3e   : > { %v351_v62 = vadd.f32 %v350_v42, %v349_v41  ;;  %v1416_v56 = vunpack.c.l.bf16 %v1241_v40  ;;  %v1417_v0 = vunpack.c.l.bf16 %v1251_v46  ;;  %v282_v1 = vrot.slane %v281_v44, 1 }
  0x3f   : > { %646 = vmatprep.mubr.bf16.mxu0 %v515_v53  ;;  %v296_v2 = vrot.slane %v295_v45, 1  ;;  %v310_v3 = vrot.slane %v309_v48, 1  ;;  %v362_v4 = vrot.slane %v361_v54, 4  ;;  %v324_v5 = vrot.slane %v323_v58, 1 }
  0x40   : > { %v375_v63 = vadd.f32 %v1417_v0, %v1416_v56  ;;  %v338_v6 = vrot.slane %v337_v60, 1  ;;  %v352_v7 = vrot.slane %v351_v62, 1  ;;  %v283_v8 = vadd.f32 %v282_v1, %v281_v44 }
  0x41   : > { %v297_v39 = vadd.f32 %v296_v2, %v295_v45  ;;  %v311_v10 = vadd.f32 %v310_v3, %v309_v48  ;;  %v363_v11 = vadd.f32 %v362_v4, %v361_v54  ;;  %v325_v15 = vadd.f32 %v324_v5, %v323_v58  ;;  %v993_v54 = vld [vmem:[%s1409_s3 + $0x30] sm:$0xff]   ;;  %v994_v58 = vld [vmem:[%s1409_s3 + $0x38] sm:$0xff]   ;;  %v865_v4 = vld [vmem:[%s1410_s4] ss:$0 sm:$0xff] }
  0x42   : > { %v376_v38 = vrot.slane %v375_v63, 4  ;;  %v339_v23 = vadd.f32 %v338_v6, %v337_v60  ;;  %v353_v55 = vadd.f32 %v352_v7, %v351_v62  ;;  %v390_v22 = vmul.f32 0.0625, %v283_v8  ;;  %923 = vmatpush3.bf16.msra.mxu1 %v993_v54  ;;  %v848_v62 = vld [vmem:[%s1408_s2] ss:$0 sm:$0xff] }
  0x43   : > { %v364_v40 = vrot.slane %v363_v11, 2  ;;  %v392_v46 = vmul.f32 0.0625, %v297_v39  ;;  %v394_v28 = vmul.f32 0.0625, %v311_v10  ;;  %v396_v35 = vmul.f32 0.0625, %v325_v15  ;;  %924 = vmatprep.subr.bf16.mxu1 %v1059_v9 }
  0x44   : > { %v377_v20 = vadd.f32 %v376_v38, %v375_v63  ;;  %v398_v61 = vmul.f32 0.0625, %v339_v23  ;;  %v400_v59 = vmul.f32 0.0625, %v353_v55  ;;  %v406_v13 = vpack.c.bf16 %v390_v22, %v390_v22 }
  0x45   : > { %v365_v12 = vadd.f32 %v364_v40, %v363_v11  ;;  %v408_v14 = vpack.c.bf16 %v392_v46, %v392_v46  ;;  %v410_v16 = vpack.c.bf16 %v394_v28, %v394_v28  ;;  %v412_v18 = vpack.c.bf16 %v396_v35, %v396_v35 }
  0x46   : > { %v378_v30 = vrot.slane %v377_v20, 2  ;;  %v414_v19 = vpack.c.bf16 %v398_v61, %v398_v61  ;;  %v416_v21 = vpack.c.bf16 %v400_v59, %v400_v59  ;;  %v477_v25 = vunpack.c.l.b16 %v406_v13  ;;  %925 = vmatpush3.bf16.msra.mxu1 %v994_v58 }
  0x47   : > { %v366_v24 = vrot.slane %v365_v12, 1  ;;  %v479_v27 = vunpack.c.l.b16 %v408_v14  ;;  %v481_v26 = vunpack.c.l.b16 %v410_v16  ;;  %v483_v31 = vunpack.c.l.b16 %v412_v18 }
  0x48   : > { %v379_v17 = vadd.f32 %v378_v30, %v377_v20  ;;  %v485_v34 = vunpack.c.l.b16 %v414_v19  ;;  %v487_v41 = vunpack.c.l.b16 %v416_v21 }
  0x49   : > { %v367_v32 = vadd.f32 %v366_v24, %v365_v12  ;;  %v494_v36 = vsel %vm493_vm0, %v479_v27, %v477_v25 }
  0x4a   : > { %v380_v29 = vrot.slane %v379_v17, 1  ;;  %v496_v43 = vsel %vm495_vm1, %v481_v26, %v494_v36 }
  0x4b   : > { %v402_v47 = vmul.f32 0.0625, %v367_v32  ;;  %v498_v49 = vsel %vm497_vm2, %v483_v31, %v496_v43 }
  0x4c   : > { %v381_v33 = vadd.f32 %v380_v29, %v379_v17  ;;  %v500_v53 = vsel %vm499_vm3, %v485_v34, %v498_v49 }
  0x4d   : > { %v418_v57 = vpack.c.bf16 %v402_v47, %v402_v47  ;;  %v502_v42 = vsel %vm501_vm4, %v487_v41, %v500_v53 }
  0x4e   : > { %v404_v51 = vmul.f32 0.0625, %v381_v33 }
  0x4f   : > { %v489_v44 = vunpack.c.l.b16 %v418_v57 }
  0x50   : > { %v420_v37 = vpack.c.bf16 %v404_v51, %v404_v51 }
  0x51   : > { %v504_v48 = vsel %vm503_vm5, %v489_v44, %v502_v42 }
  0x52   : > { %v491_v45 = vunpack.c.l.b16 %v420_v37 }
  0x54   : > { %v506_v50 = vsel %vm505_vm6, %v491_v45, %v504_v48 }
  0x55   : > { %v514_v52 = vpack.c.b16 %v506_v50, %v506_v50 }
  0x57   : > { %647 = vmatmul.mubr.bf16.vlgmr.msra.gmra.mrb[0].mxu0 %v514_v52 }
 0x12a   : > { %v895_v60 = vpop.f32.mrb[0].mxu0 }
 0x12b   : > { %v896_v56 = vpop.f32.mrb[1].mxu0 }
 0x12c   : > { %v897_v0 = vadd.f32 %v896_v56, %v895_v60  ;;  %v898_v63 = vpop.f32.mrb[2].mxu0 }
 0x12d   : > { %v899_v1 = vpop.f32.mrb[3].mxu0 }
 0x12e   : > { %v649_v2 = vadd.f32 %v897_v0, %v848_v62 }
 0x130   : > { %v654_v3 = vpack.c.bf16 %v649_v2, %v649_v2 }
 0x132   : > { %927 = vmatmul.mubr.bf16.vlgmr.msra.gmra.mrb[0].mxu1 %v654_v3 }
 0x205   : > { %v760_v9 = vpop.f32.mrb[0].mxu1 }
 0x206   : > { %v761_v5 = vadd.f32 %v865_v4, %v760_v9  ;;  %v928_v6 = vpop.f32.mrb[1].mxu1 }
 0x207   : > { %v763_v7 = vpop.f32.mrb[2].mxu1 }
 0x208   : > { %766 = vst [vmem:[%s220_s17] sm:$0xff] %v761_v5  ;;  %v929_v38 = vpop.f32.mrb[3].mxu1 }
 0x209   : > { %1008 = shalt.err (!%p1005_p3)
}
 0x20a   : > { %s1009_s11 = scalar_lea.hbm %s1364_s30, 128  ;;  %s1013_s7 = scalar_lea.hbm %s1411_s5, 256 }
 0x20b   : > { %p1010_p4 = scmp.ne.s32.totalorder %s1364_s30, %s1009_s11  ;;  %p1014_p9 = scmp.lt.u32.totalorder %s1364_s30, %s1411_s5 }
 0x20c   : > { %p1015_p10 = scmp.lt.u32.totalorder %s1013_s7, %s1009_s11  ;;  %p1017_p12 = scmp.lt.u32.totalorder %s1009_s11, %s1364_s30 }
 0x20d   : > { %p1011_p7 = pnand %p1010_p4, %p1130_p5 }
 0x20e   : > { %p1016_p11 = por %p1015_p10, %p1014_p9 }
 0x20f   : > { %p1012_p8 = pneg %p1011_p7 }
 0x210   : > { %p1018_p13 = por %p1017_p12, %p1016_p11 }
 0x212   : > { %p1019_p0 = pnand %p1018_p13, %p1012_p8 }
 0x214   : > { %1022 = shalt.err (!%p1019_p0)
}
 0x215   : > { %930 = dma.vmem_to_hbm [thread:$0]  (%p1130_p5), %s1366_s23, 128, %s1364_s30, %s768_s6  }
 0x216 PF: > { %p936_p1 = scmp.ge.s32.totalorder %s1057_s21, 2  ;;  %s793_s16 = sand.u32 1, %s1045_s18  }
 0x217   : > { %s794_s17 = scalar_lea.sflag [#allocation3], %s793_s16 }
 0x218   : > { %p933_p2 = pnand %p936_p1, %p1134_p6 }
 0x21a   : > { %1040 = dma.done.wait (!%p933_p2), %s794_s17, 128  }
 0x21b   : > { %1042 = vsyncadd (!%p933_p2), %s794_s17, 4294967168  ;;  %p15_p3 = scmp.ge.s32.totalorder %s1117_s24, 4   ;;  %s1418_s18 = smov %s1049_s19 }
 0x21c   : > { %s1419_s19 = smov %s1053_s20  ;;  %s1420_s20 = smov %s1128_s27 }
 0x21d   : > { %s1421_s21 = smov %s1117_s24  ;;  %17 = sbr.rel (!%p15_p3) target bundleno = 3 (0x3), region = 75 }
 0x224   :  { %799 = vsyncpa [#allocation3], 1 }
 0x225   :  { %801 = vsyncpa [#allocation3 + $0x1], 1 }

</bundles_post_ra>
